<compile_context>
chip_gen: v7x
topology: tpu7x:2x2x1
jax: 0.10.0
libtpu: 0.0.40
codegen_flags: <defaults>
</compile_context>

<pallas_src>
import jax
import jax.numpy as jnp
from jax.experimental import pallas as pl
from jax.experimental.pallas import tpu as pltpu

NUM_CLASSES = 11  # len(label_map)


# ----------------------------------------------------------------------------
# Fused kernel: preprocess (gt & pred) + 1x1-conv seg head + softmax + BCE
# partial sum.  One grid step = one (batch, HW-tile) block.
# ----------------------------------------------------------------------------
def _fused_parse_bce_kernel(w_ref, b_ref, gt_ref, pred_ref,
                            gtp_ref, p_ref, bce_ref):
    c = gt_ref.shape[0]        # channels (3)

    wv = w_ref[...]            # (K, C) f32 — classes on sublanes
    bv = b_ref[...]            # (K, 1) f32

    # --- preprocessing, matching the torch module --------------------------
    gt = (gt_ref[...] + 1.0) * 0.5
    gt = jnp.clip(gt, 0.0, 1.0) * 255.0           # gt path clips to [0, 1]
    pr = (pred_ref[...] + 1.0) * 0.5 * 255.0      # pred path: no clip

    def seg_softmax(x):
        # x: (C, T).  logits[k, t] = b[k] + sum_c w[k, c] * x[c, t]
        # computed as (K,1) x (1,T) broadcast mul-adds on the VPU (the 3-deep
        # contraction is a pathological MXU shape, so keep it off the MXU).
        logits = bv + wv[:, 0:1] * x[0:1, :]
        for cc in range(1, c):
            logits = logits + wv[:, cc:cc + 1] * x[cc:cc + 1, :]
        m = jnp.max(logits, axis=0, keepdims=True)      # XLU cross-sublane max
        e = jnp.exp(logits - m)                         # EUP
        inv = 1.0 / jnp.sum(e, axis=0, keepdims=True)   # exact; only (1, T)
        return e * inv

    gtp = seg_softmax(gt)   # gtparsing tile (f32)
    p = seg_softmax(pr)     # parsing tile   (f32)

    gtp_ref[...] = gtp.astype(gtp_ref.dtype)
    p_ref[...] = p.astype(p_ref.dtype)

    # --- fused BCEWithLogitsLoss(input=gtparsing, target=parsing) ----------
    # elementwise: max(x,0) - x*t + log1p(exp(-|x|)); per-tile partial sum;
    # the final mean is done in JAX (keeps both grid axes 'parallel').
    x = gtp
    t = p
    elt = jnp.maximum(x, 0.0) - x * t + jnp.log1p(jnp.exp(-jnp.abs(x)))
    # Lane-dense 128-wide write of the broadcast scalar partial (unmasked vst).
    bce_ref[...] = jnp.full(bce_ref.shape, jnp.sum(elt), dtype=jnp.float32)


# ----------------------------------------------------------------------------
# Wrapper mirroring parsefacesegment_faces.forward
# ----------------------------------------------------------------------------
def _pick_hw_tile(hw, target):
    """Largest multiple-of-128 divisor of hw that is <= target (else hw)."""
    if hw <= target or hw % 128 != 0:
        return hw
    best = 128
    cand = 128
    while cand <= target:
        if hw % cand == 0:
            best = cand
        cand += 128
    return best


def parsefacesegment_faces_forward(pred_img, gt, w, b, *, hw_tile_target=8192):
    """Returns (loss, parsing, gtparsing) like the torch module."""
    n, c, h, wd = pred_img.shape
    k = w.shape[0]
    hw = h * wd
    t = _pick_hw_tile(hw, hw_tile_target)
    n_tiles = hw // t

    gt3 = gt.reshape(n, c, hw).astype(jnp.float32)
    pr3 = pred_img.reshape(n, c, hw).astype(jnp.float32)
    w2 = w.astype(jnp.float32).reshape(k, c)      # (K, C): classes on sublanes
    b2 = b.astype(jnp.float32).reshape(k, 1)

    w_spec = pl.BlockSpec((k, c), lambda i, j: (0, 0))
    b_spec = pl.BlockSpec((k, 1), lambda i, j: (0, 0))
    img_spec = pl.BlockSpec((None, c, t), lambda i, j: (i, 0, j))
    out_spec = pl.BlockSpec((None, k, t), lambda i, j: (i, 0, j))
    bce_spec = pl.BlockSpec((None, None, 1, 128), lambda i, j: (i, j, 0, 0))

    gtparsing, parsing, partials = pl.pallas_call(
        _fused_parse_bce_kernel,
        out_shape=(
            jax.ShapeDtypeStruct((n, k, hw), jnp.float32),            # gtparsing
            jax.ShapeDtypeStruct((n, k, hw), jnp.float32),            # parsing
            jax.ShapeDtypeStruct((n, n_tiles, 1, 128), jnp.float32),  # BCE partials
        ),
        grid=(n, n_tiles),
        in_specs=[w_spec, b_spec, img_spec, img_spec],
        out_specs=(out_spec, out_spec, bce_spec),
        compiler_params=pltpu.CompilerParams(
            dimension_semantics=("parallel", "parallel")),
    )(w2, b2, gt3, pr3)

    # Per-tile partials (each a lane-broadcast scalar) -> final mean in JAX.
    loss = jnp.sum(partials[:, :, 0, 0]) / jnp.float32(n * k * hw)
    return loss, parsing.reshape(n, k, h, wd), gtparsing.reshape(n, k, h, wd)


# ----------------------------------------------------------------------------
# Pure-JAX reference (numerical sanity check).  Element-wise math only — no
# einsum/dot, so it is exact fp32 on TPU regardless of matmul precision.
# ----------------------------------------------------------------------------
def _ref_forward(pred_img, gt, w, b):
    def parse(img, do_clip):
        x = (img + 1.0) / 2.0
        if do_clip:
            x = jnp.clip(x, 0.0, 1.0)
        x = x * 255.0                                              # (N, C, H, W)
        logits = jnp.sum(w[None, :, :, None, None] * x[:, None, :, :, :], axis=2)
        logits = logits + b.reshape(1, -1, 1, 1)                   # (N, K, H, W)
        return jax.nn.softmax(logits, axis=1)

    gtp = parse(gt, True)
    p = parse(pred_img, False)
    x, t = gtp, p
    loss = jnp.mean(jnp.maximum(x, 0.0) - x * t + jnp.log1p(jnp.exp(-jnp.abs(x))))
    return loss, p, gtp


if __name__ == "__main__":
    # Small shapes: batch=2, RGB channels=3, spatial 16x16 (H*W = 256 lanes).
    N, C, H, W = 2, 3, 16, 16

    key = jax.random.PRNGKey(0)
    k_pred, k_gt = jax.random.split(key)
    pred_img = jax.random.uniform(k_pred, (N, C, H, W), jnp.float32, -1.0, 1.0)
    gt = jax.random.uniform(k_gt, (N, C, H, W), jnp.float32, -1.0, 1.0)

    # Deterministic synthetic segmentation-head parameters.
    wkey = jax.random.PRNGKey(42)
    w = 0.01 * jax.random.normal(wkey, (NUM_CLASSES, C), jnp.float32)
    b = jnp.linspace(-0.5, 0.5, NUM_CLASSES, dtype=jnp.float32)

    # hw_tile_target=128 forces the HW grid axis to be exercised (2 tiles of
    # 128 lanes each); production sizes use the 8192-lane default.
    loss, parsing, gtparsing = parsefacesegment_faces_forward(
        pred_img, gt, w, b, hw_tile_target=128)
    jax.block_until_ready((loss, parsing, gtparsing))

    # Sanity check vs. pure-JAX reference.
    ref_loss, ref_p, ref_gtp = _ref_forward(pred_img, gt, w, b)
    assert jnp.allclose(parsing, ref_p, atol=1e-3, rtol=1e-3), "parsing mismatch"
    assert jnp.allclose(gtparsing, ref_gtp, atol=1e-3, rtol=1e-3), "gtparsing mismatch"
    assert jnp.allclose(loss, ref_loss, atol=1e-3, rtol=1e-3), "loss mismatch"

    print("KERNEL_OK")
</pallas_src>

<mosaic_0001>
module attributes {stable_mosaic.version = 11 : i64} {
  func.func @_fused_parse_bce_kernel(%arg0: i32, %arg1: i32, %arg2: memref<11x3xf32, #tpu.memory_space<vmem>>, %arg3: memref<11x1xf32, #tpu.memory_space<vmem>>, %arg4: memref<1x3x128xf32, #tpu.memory_space<vmem>>, %arg5: memref<1x3x128xf32, #tpu.memory_space<vmem>>, %arg6: memref<1x11x128xf32, #tpu.memory_space<vmem>>, %arg7: memref<1x11x128xf32, #tpu.memory_space<vmem>>, %arg8: memref<1x1x1x128xf32, #tpu.memory_space<vmem>>) attributes {dimension_semantics = [#tpu.dimension_semantics<parallel>, #tpu.dimension_semantics<parallel>], iteration_bounds = array<i64: 2, 2>, scalar_prefetch = 0 : i64, scratch_operands = 0 : i64, tpu.core_type = #tpu.core_type<tc>, window_params = [{pipeline_mode = #tpu.pipeline_mode<synchronous>, transform_indices = @transform_0, window_bounds = array<i64: 11, 3>}, {pipeline_mode = #tpu.pipeline_mode<synchronous>, transform_indices = @transform_1, window_bounds = array<i64: 11, 1>}, {transform_indices = @transform_2, window_bounds = array<i64: 1, 3, 128>}, {transform_indices = @transform_3, window_bounds = array<i64: 1, 3, 128>}, {transform_indices = @transform_4, window_bounds = array<i64: 1, 11, 128>}, {transform_indices = @transform_5, window_bounds = array<i64: 1, 11, 128>}, {transform_indices = @transform_6, window_bounds = array<i64: 1, 1, 1, 128>}]} {
    %c0 = arith.constant 0 : index
    %c0_0 = arith.constant 0 : index
    %0 = vector.load %arg2[%c0, %c0_0] : memref<11x3xf32, #tpu.memory_space<vmem>>, vector<11x3xf32>
    %c0_1 = arith.constant 0 : index
    %c0_2 = arith.constant 0 : index
    %1 = vector.load %arg3[%c0_1, %c0_2] : memref<11x1xf32, #tpu.memory_space<vmem>>, vector<11x1xf32>
    %c0_3 = arith.constant 0 : index
    %c0_4 = arith.constant 0 : index
    %c0_5 = arith.constant 0 : index
    %2 = vector.load %arg4[%c0_3, %c0_4, %c0_5] : memref<1x3x128xf32, #tpu.memory_space<vmem>>, vector<1x3x128xf32>
    %3 = vector.shape_cast %2 : vector<1x3x128xf32> to vector<3x128xf32>
    %cst = arith.constant 1.000000e+00 : f32
    %4 = vector.broadcast %cst : f32 to vector<3x128xf32>
    %5 = arith.addf %3, %4 : vector<3x128xf32>
    %cst_6 = arith.constant 5.000000e-01 : f32
    %6 = vector.broadcast %cst_6 : f32 to vector<3x128xf32>
    %7 = arith.mulf %5, %6 : vector<3x128xf32>
    %cst_7 = arith.constant 0.000000e+00 : f32
    %cst_8 = arith.constant 1.000000e+00 : f32
    %8 = vector.broadcast %cst_7 : f32 to vector<3x128xf32>
    %9 = arith.maximumf %8, %7 : vector<3x128xf32>
    %10 = vector.broadcast %cst_8 : f32 to vector<3x128xf32>
    %11 = arith.minimumf %10, %9 : vector<3x128xf32>
    %cst_9 = arith.constant 2.550000e+02 : f32
    %12 = vector.broadcast %cst_9 : f32 to vector<3x128xf32>
    %13 = arith.mulf %11, %12 : vector<3x128xf32>
    %c0_10 = arith.constant 0 : index
    %c0_11 = arith.constant 0 : index
    %c0_12 = arith.constant 0 : index
    %14 = vector.load %arg5[%c0_10, %c0_11, %c0_12] : memref<1x3x128xf32, #tpu.memory_space<vmem>>, vector<1x3x128xf32>
    %15 = vector.shape_cast %14 : vector<1x3x128xf32> to vector<3x128xf32>
    %cst_13 = arith.constant 1.000000e+00 : f32
    %16 = vector.broadcast %cst_13 : f32 to vector<3x128xf32>
    %17 = arith.addf %15, %16 : vector<3x128xf32>
    %cst_14 = arith.constant 5.000000e-01 : f32
    %18 = vector.broadcast %cst_14 : f32 to vector<3x128xf32>
    %19 = arith.mulf %17, %18 : vector<3x128xf32>
    %cst_15 = arith.constant 2.550000e+02 : f32
    %20 = vector.broadcast %cst_15 : f32 to vector<3x128xf32>
    %21 = arith.mulf %19, %20 : vector<3x128xf32>
    %22 = vector.extract_strided_slice %0 {offsets = [0, 0], sizes = [11, 1], strides = [1, 1]} : vector<11x3xf32> to vector<11x1xf32>
    %23 = vector.extract_strided_slice %13 {offsets = [0, 0], sizes = [1, 128], strides = [1, 1]} : vector<3x128xf32> to vector<1x128xf32>
    %24 = vector.broadcast %22 : vector<11x1xf32> to vector<11x128xf32>
    %25 = vector.broadcast %23 : vector<1x128xf32> to vector<11x128xf32>
    %26 = arith.mulf %24, %25 : vector<11x128xf32>
    %27 = vector.broadcast %1 : vector<11x1xf32> to vector<11x128xf32>
    %28 = arith.addf %27, %26 : vector<11x128xf32>
    %29 = vector.extract_strided_slice %0 {offsets = [0, 1], sizes = [11, 1], strides = [1, 1]} : vector<11x3xf32> to vector<11x1xf32>
    %30 = vector.extract_strided_slice %13 {offsets = [1, 0], sizes = [1, 128], strides = [1, 1]} : vector<3x128xf32> to vector<1x128xf32>
    %31 = vector.broadcast %29 : vector<11x1xf32> to vector<11x128xf32>
    %32 = vector.broadcast %30 : vector<1x128xf32> to vector<11x128xf32>
    %33 = arith.mulf %31, %32 : vector<11x128xf32>
    %34 = arith.addf %28, %33 : vector<11x128xf32>
    %35 = vector.extract_strided_slice %0 {offsets = [0, 2], sizes = [11, 1], strides = [1, 1]} : vector<11x3xf32> to vector<11x1xf32>
    %36 = vector.extract_strided_slice %13 {offsets = [2, 0], sizes = [1, 128], strides = [1, 1]} : vector<3x128xf32> to vector<1x128xf32>
    %37 = vector.broadcast %35 : vector<11x1xf32> to vector<11x128xf32>
    %38 = vector.broadcast %36 : vector<1x128xf32> to vector<11x128xf32>
    %39 = arith.mulf %37, %38 : vector<11x128xf32>
    %40 = arith.addf %34, %39 : vector<11x128xf32>
    %cst_16 = arith.constant dense<0xFF800000> : vector<128xf32>
    %41 = vector.multi_reduction <maximumf>, %40, %cst_16 [0] : vector<11x128xf32> to vector<128xf32>
    %42 = vector.shape_cast %41 : vector<128xf32> to vector<1x128xf32>
    %43 = vector.broadcast %42 : vector<1x128xf32> to vector<11x128xf32>
    %44 = arith.subf %40, %43 : vector<11x128xf32>
    %45 = math.exp %44 : vector<11x128xf32>
    %cst_17 = arith.constant dense<0.000000e+00> : vector<128xf32>
    %46 = vector.multi_reduction <add>, %45, %cst_17 [0] : vector<11x128xf32> to vector<128xf32>
    %47 = vector.shape_cast %46 : vector<128xf32> to vector<1x128xf32>
    %cst_18 = arith.constant 1.000000e+00 : f32
    %48 = vector.broadcast %cst_18 : f32 to vector<1x128xf32>
    %49 = arith.divf %48, %47 : vector<1x128xf32>
    %50 = vector.broadcast %49 : vector<1x128xf32> to vector<11x128xf32>
    %51 = arith.mulf %45, %50 : vector<11x128xf32>
    %52 = vector.extract_strided_slice %0 {offsets = [0, 0], sizes = [11, 1], strides = [1, 1]} : vector<11x3xf32> to vector<11x1xf32>
    %53 = vector.extract_strided_slice %21 {offsets = [0, 0], sizes = [1, 128], strides = [1, 1]} : vector<3x128xf32> to vector<1x128xf32>
    %54 = vector.broadcast %52 : vector<11x1xf32> to vector<11x128xf32>
    %55 = vector.broadcast %53 : vector<1x128xf32> to vector<11x128xf32>
    %56 = arith.mulf %54, %55 : vector<11x128xf32>
    %57 = vector.broadcast %1 : vector<11x1xf32> to vector<11x128xf32>
    %58 = arith.addf %57, %56 : vector<11x128xf32>
    %59 = vector.extract_strided_slice %0 {offsets = [0, 1], sizes = [11, 1], strides = [1, 1]} : vector<11x3xf32> to vector<11x1xf32>
    %60 = vector.extract_strided_slice %21 {offsets = [1, 0], sizes = [1, 128], strides = [1, 1]} : vector<3x128xf32> to vector<1x128xf32>
    %61 = vector.broadcast %59 : vector<11x1xf32> to vector<11x128xf32>
    %62 = vector.broadcast %60 : vector<1x128xf32> to vector<11x128xf32>
    %63 = arith.mulf %61, %62 : vector<11x128xf32>
    %64 = arith.addf %58, %63 : vector<11x128xf32>
    %65 = vector.extract_strided_slice %0 {offsets = [0, 2], sizes = [11, 1], strides = [1, 1]} : vector<11x3xf32> to vector<11x1xf32>
    %66 = vector.extract_strided_slice %21 {offsets = [2, 0], sizes = [1, 128], strides = [1, 1]} : vector<3x128xf32> to vector<1x128xf32>
    %67 = vector.broadcast %65 : vector<11x1xf32> to vector<11x128xf32>
    %68 = vector.broadcast %66 : vector<1x128xf32> to vector<11x128xf32>
    %69 = arith.mulf %67, %68 : vector<11x128xf32>
    %70 = arith.addf %64, %69 : vector<11x128xf32>
    %cst_19 = arith.constant dense<0xFF800000> : vector<128xf32>
    %71 = vector.multi_reduction <maximumf>, %70, %cst_19 [0] : vector<11x128xf32> to vector<128xf32>
    %72 = vector.shape_cast %71 : vector<128xf32> to vector<1x128xf32>
    %73 = vector.broadcast %72 : vector<1x128xf32> to vector<11x128xf32>
    %74 = arith.subf %70, %73 : vector<11x128xf32>
    %75 = math.exp %74 : vector<11x128xf32>
    %cst_20 = arith.constant dense<0.000000e+00> : vector<128xf32>
    %76 = vector.multi_reduction <add>, %75, %cst_20 [0] : vector<11x128xf32> to vector<128xf32>
    %77 = vector.shape_cast %76 : vector<128xf32> to vector<1x128xf32>
    %cst_21 = arith.constant 1.000000e+00 : f32
    %78 = vector.broadcast %cst_21 : f32 to vector<1x128xf32>
    %79 = arith.divf %78, %77 : vector<1x128xf32>
    %80 = vector.broadcast %79 : vector<1x128xf32> to vector<11x128xf32>
    %81 = arith.mulf %75, %80 : vector<11x128xf32>
    %c0_22 = arith.constant 0 : index
    %c0_23 = arith.constant 0 : index
    %c0_24 = arith.constant 0 : index
    %82 = vector.load %arg6[%c0_22, %c0_23, %c0_24] : memref<1x11x128xf32, #tpu.memory_space<vmem>>, vector<1x11x128xf32>
    %83 = vector.shape_cast %82 : vector<1x11x128xf32> to vector<11x128xf32>
    %84 = vector.shape_cast %51 : vector<11x128xf32> to vector<1x11x128xf32>
    tpu.vector_store %arg6[%c0_22, %c0_23, %c0_24], %84 {strides = array<i32>} : memref<1x11x128xf32, #tpu.memory_space<vmem>>, vector<1x11x128xf32>,
    %c0_25 = arith.constant 0 : index
    %c0_26 = arith.constant 0 : index
    %c0_27 = arith.constant 0 : index
    %85 = vector.load %arg7[%c0_25, %c0_26, %c0_27] : memref<1x11x128xf32, #tpu.memory_space<vmem>>, vector<1x11x128xf32>
    %86 = vector.shape_cast %85 : vector<1x11x128xf32> to vector<11x128xf32>
    %87 = vector.shape_cast %81 : vector<11x128xf32> to vector<1x11x128xf32>
    tpu.vector_store %arg7[%c0_25, %c0_26, %c0_27], %87 {strides = array<i32>} : memref<1x11x128xf32, #tpu.memory_space<vmem>>, vector<1x11x128xf32>,
    %cst_28 = arith.constant 0.000000e+00 : f32
    %88 = vector.broadcast %cst_28 : f32 to vector<11x128xf32>
    %89 = arith.maximumf %51, %88 : vector<11x128xf32>
    %90 = arith.mulf %51, %81 : vector<11x128xf32>
    %91 = arith.subf %89, %90 : vector<11x128xf32>
    %92 = math.absf %51 : vector<11x128xf32>
    %cst_29 = arith.constant 0.000000e+00 : f32
    %93 = vector.broadcast %cst_29 : f32 to vector<11x128xf32>
    %94 = arith.subf %93, %92 : vector<11x128xf32>
    %95 = math.exp %94 : vector<11x128xf32>
    %96 = math.log1p %95 : vector<11x128xf32>
    %97 = arith.addf %91, %96 : vector<11x128xf32>
    %98 = vector.shape_cast %97 : vector<11x128xf32> to vector<1x11x128xf32>
    %cst_30 = arith.constant dense<0.000000e+00> : vector<1xf32>
    %99 = vector.multi_reduction <add>, %98, %cst_30 [1, 2] : vector<1x11x128xf32> to vector<1xf32>
    %100 = vector.shape_cast %99 : vector<1xf32> to vector<1x1x1xf32>
    %101 = vector.extract %100[0, 0, 0] : f32 from vector<1x1x1xf32>
    %102 = vector.broadcast %101 : f32 to vector<1x128xf32>
    %c0_31 = arith.constant 0 : index
    %c0_32 = arith.constant 0 : index
    %c0_33 = arith.constant 0 : index
    %c0_34 = arith.constant 0 : index
    %103 = vector.load %arg8[%c0_31, %c0_32, %c0_33, %c0_34] : memref<1x1x1x128xf32, #tpu.memory_space<vmem>>, vector<1x1x1x128xf32>
    %104 = vector.shape_cast %103 : vector<1x1x1x128xf32> to vector<1x128xf32>
    %105 = vector.shape_cast %102 : vector<1x128xf32> to vector<1x1x1x128xf32>
    tpu.vector_store %arg8[%c0_31, %c0_32, %c0_33, %c0_34], %105 {strides = array<i32>} : memref<1x1x1x128xf32, #tpu.memory_space<vmem>>, vector<1x1x1x128xf32>,
    return
  }
  func.func @transform_0(%arg0: i32, %arg1: i32) -> (i32, i32) {
    %c0_i32 = arith.constant 0 : i32
    %c0_i32_0 = arith.constant 0 : i32
    %c0_i32_1 = arith.constant 0 : i32
    return %c0_i32, %c0_i32_0 : i32, i32
  }
  func.func @transform_1(%arg0: i32, %arg1: i32) -> (i32, i32) {
    %c0_i32 = arith.constant 0 : i32
    %c0_i32_0 = arith.constant 0 : i32
    %c0_i32_1 = arith.constant 0 : i32
    return %c0_i32, %c0_i32_0 : i32, i32
  }
  func.func @transform_2(%arg0: i32, %arg1: i32) -> (i32, i32, i32) {
    %c0_i32 = arith.constant 0 : i32
    %c0_i32_0 = arith.constant 0 : i32
    return %arg0, %c0_i32, %arg1 : i32, i32, i32
  }
  func.func @transform_3(%arg0: i32, %arg1: i32) -> (i32, i32, i32) {
    %c0_i32 = arith.constant 0 : i32
    %c0_i32_0 = arith.constant 0 : i32
    return %arg0, %c0_i32, %arg1 : i32, i32, i32
  }
  func.func @transform_4(%arg0: i32, %arg1: i32) -> (i32, i32, i32) {
    %c0_i32 = arith.constant 0 : i32
    %c0_i32_0 = arith.constant 0 : i32
    return %arg0, %c0_i32, %arg1 : i32, i32, i32
  }
  func.func @transform_5(%arg0: i32, %arg1: i32) -> (i32, i32, i32) {
    %c0_i32 = arith.constant 0 : i32
    %c0_i32_0 = arith.constant 0 : i32
    return %arg0, %c0_i32, %arg1 : i32, i32, i32
  }
  func.func @transform_6(%arg0: i32, %arg1: i32) -> (i32, i32, i32, i32) {
    %c0_i32 = arith.constant 0 : i32
    %c0_i32_0 = arith.constant 0 : i32
    %c0_i32_1 = arith.constant 0 : i32
    return %arg0, %arg1, %c0_i32, %c0_i32_0 : i32, i32, i32, i32
  }
}

</mosaic_0001>

<bundles_post_ra>
// kernel: tpu_custom_call.1
= control target key start
LH: loop header
LB: loop body
LE: loop exit
PB: predicated region body
PF: predicated region fallthrough
CT: control target
= control target key end

     0   :  { %s1225_s0 = inlined_call_operand.vmem [shape: f32[11,3], index: 0, kind: input, shape index: {}]   ;;  %s1226_s1 = inlined_call_operand.vmem [shape: f32[11,1], index: 1, kind: input, shape index: {}]   ;;  %s1227_s2 = inlined_call_operand.vmem [shape: f32[2,3,256], index: 2, kind: input, shape index: {}]   ;;  %s1228_s3 = inlined_call_operand.vmem [shape: f32[2,3,256], index: 3, kind: input, shape index: {}]   ;;  %s1229_s4 = inlined_call_operand.vmem [shape: f32[2,11,256], index: 4, kind: output, shape index: {0}]   ;;  %s1230_s5 = inlined_call_operand.vmem [shape: f32[2,11,256], index: 5, kind: output, shape index: {1}]   ;;  %s1231_s6 = inlined_call_operand.hbm [shape: f32[2,2,1,128], index: 6, kind: output, shape index: {2}]  }
   0x1   :  { %1232 = sst [smem:[#allocation7_spill]] %s1225_s0 }
   0x2   :  { %12 = vsyncpa [#allocation5], 0 }
   0x3   :  { %14 = vsyncpa [#allocation5 + $0x1], 0  ;;  %s1042_s21 = smov 0   ;;  %s1044_s22 = smov 0  }
   0x4   :  { %s1046_s23 = smov 0   ;;  %s1048_s24 = smov 0  }
   0x5   :  { %s1050_s25 = smov 0   ;;  %s1052_s26 = smov 0  }
   0x6   :  { %s1054_s27 = smov 0   ;;  %s1056_s28 = smov 0  }
   0x7 LB: > { %s785_s29 = sadd.s32 4294967295, %s1001_s28   ;;  %s786_s30 = sadd.s32 4294967294, %s1001_s28   ;;  %s1001_s28 = sphi %s1056_s28, %s20_s28   ;;  %s997_s27 = sphi %s1054_s27, %s1243_s27   ;;  %s993_s26 = sphi %s1052_s26, %s1242_s26   ;;  %s989_s25 = sphi %s1050_s25, %s1241_s25   ;;  %s985_s24 = sphi %s1048_s24, %s1240_s24   ;;  %s981_s23 = sphi %s1046_s23, %s1239_s23   ;;  %s977_s22 = sphi %s1044_s22, %s1238_s22   ;;  %s973_s21 = sphi %s1042_s21, %s1237_s21  }
   0x8   : > { %s29_s7 = sadd.s32 1, %s993_s26  ;;  %s32_s8 = sadd.s32 1, %s997_s27 }
   0x9   : > { %p30_p0 = scmp.ge.s32.totalorder %s29_s7, 2  ;;  %p149_p1 = scmp.ne.s32.totalorder %s981_s23, %s977_s22 }
   0xa   : > { %p150_p2 = scmp.eq.s32.totalorder %s785_s29, 3  ;;  %p211_p5 = scmp.ne.s32.totalorder %s977_s22, %s973_s21 }
   0xb   : > { %s1245_s7 = smov (%p30_p0, %s29_s7), 0  ;;  %s1247_s8 = smov (!%p30_p0, %s32_s8), %s997_s27 }
   0xc   : > { %s135_s9 = ssub.s32 %s993_s26, %s1245_s7  ;;  %p1093_p3 = por %p150_p2, %p149_p1 }
   0xd   : > { %p34_p4 = scmp.ge.s32.totalorder %s1247_s8, 2  ;;  %p212_p6 = scmp.eq.s32.totalorder %s786_s30, 3 }
   0xe   : > { %p789_p7 = scmp.ge.s32.totalorder %s1001_s28, 1  ;;  %p258_p9 = scmp.lt.s32.totalorder %s1001_s28, 5 }
   0xf   : > { %s1249_s8 = smov (%p34_p4, %s1247_s8), 0  ;;  %p1102_p8 = por %p212_p6, %p211_p5 }
  0x10   : > { %s134_s12 = ssub.s32 %s997_s27, %s1249_s8  ;;  %s139_s13 = sadd.s32 1, %s981_s23 }
  0x11   : > { %s136_s14 = sor.u32 %s135_s9, %s134_s12  ;;  %p259_p10 = pnand %p789_p7, %p258_p9 }
  0x12   : > { %p137_p11 = scmp.eq.s32.totalorder %s136_s14, 0  ;;  %v325_v0 = vld [vmem:[%s1226_s1 + $0x8] sm:$0x7] (!%p259_p10)  ;;  %s1235_s0 = sld [smem:[#allocation7_spill]] (!%p259_p10)  ;;  %v1003_v2 = vmov (!%p259_p10), 0   ;;  %v1004_v4 = vmov (!%p259_p10), 1   ;;  %v346_v11 = vlaneseq (!%p259_p10) }
  0x13   : > { %262 = sbr.rel (%p259_p10) target bundleno = 507 (0x1fb), region = 36  ;;  %883 = vset.pattern.permute.xlu1 (!%p259_p10), %v1003_v2  ;;  %882 = vset.pattern.permute.xlu0 (!%p259_p10), %v1003_v2  ;;  %v324_v5 = vld [vmem:[%s1226_s1] sm:$0xff] (!%p259_p10)  ;;  %v1005_v6 = vmov (!%p259_p10), 2   ;;  %p306_p12 = scmp.lt.s32.totalorder (!%p259_p10), %s989_s25, 1  ;;  %vm396_vm0 = vcmask (!%p259_p10), 1042432  }
  0x14   : > { %s1111_s15 = scalar_select %p137_p11, %s981_s23, %s139_s13  }
  0x15   : > { %359 = vperm.xlu1 (!%p259_p10), %883, %v325_v0   ;;  %p308_p13 = scmp.lt.s32.totalorder (!%p259_p10), %s985_s24, 1  ;;  %v347_v14 = vshrl.u32 (!%p259_p10), %v346_v11, 7 }
  0x17   : > { %v348_v18 = vsub.s32 (!%p259_p10), 0, %v347_v14  ;;  %v374_v22 = vsub.s32 (!%p259_p10), 1, %v347_v14  ;;  %v390_v29 = vsub.s32 (!%p259_p10), 2, %v347_v14 }
  0x18   : > { %v323_v1 = vld [vmem:[%s1235_s0 + $0x8] sm:$0x7] (!%p259_p10)  ;;  %v322_v3 = vld [vmem:[%s1235_s0] sm:$0xff] (!%p259_p10) }
  0x19   : > { %343 = vperm.xlu0 (!%p259_p10), %882, %v323_v1   ;;  %884 = vset.pattern.permute.xlu1 (!%p259_p10), %v1004_v4 }
  0x1a   : > { %369 = vperm.xlu1 %884, %v323_v1   ;;  %s307_s12 = scalar_select %p306_p12, %s989_s25, 1 }
  0x1b   : > { %s309_s13 = scalar_select %p308_p13, %s985_s24, 1 }
  0x1c   : > { %s792_s14 = sshll.u32 %s307_s12, 1  ;;  %s1140_s12 = sand.u32 1, %s977_s22  }
  0x1d   : > { %338 = vperm.xlu0 %882, %v322_v3   ;;  %s311_s16 = sadd.s32 %s792_s14, %s309_s13  ;;  %s790_s13 = sshll.u32 %s1140_s12, 4 }
  0x1e   : > { %365 = vperm.xlu1 %884, %v322_v3   ;;  %s793_s17 = sshll.u32 %s311_s16, 2  ;;  %s1143_s14 = scalar_lea.vmem [#allocation2], %s790_s13 }
  0x1f   : > { %s313_s20 = scalar_lea.vmem %s1227_s2, %s793_s17  ;;  %s321_s9 = scalar_lea.vmem %s1228_s3, %s793_s17 }
  0x20   : > { %v326_v7 = vld [vmem:[%s313_s20] sm:$0x7]  ;;  %s1147_s16 = scalar_lea.vmem [#allocation3], %s790_s13  ;;  %s305_s18 = scalar_lea.vmem [#allocation4], %s1140_s12 }
  0x21   : > { %354 = vperm.xlu0 %882, %v324_v5   ;;  %v327_v8 = vadd.f32 1.0, %v326_v7  ;;  %v332_v10 = vld [vmem:[%s321_s9] sm:$0x7]  ;;  %s798_s20 = sshll.u32 (%p1093_p3), %s989_s25, 2 }
  0x22   : > { %886 = vset.pattern.permute.xlu1 %v1005_v6  ;;  %v333_v13 = vadd.f32 1.0, %v332_v10  ;;  %s540_s29 = sadd.s32 (%p1093_p3), %s985_s24, %s798_s20 }
  0x23   : > { %381 = vperm.xlu1 %886, %v322_v3   ;;  %v328_v9 = vmul.f32 0.5, %v327_v8  ;;  %s799_s30 = sshll.u32 (%p1093_p3), %s540_s29, 3 }
  0x24   : > { %v334_v16 = vmul.f32 0.5, %v333_v13  ;;  %s542_s0 = scalar_lea.vmem (%p1093_p3), %s1229_s4, %s799_s30 }
  0x25   : > { %885 = vset.pattern.permute.xlu0 %v1005_v6  ;;  %v329_v12 = vmax.f32 %v328_v9, 0.0 }
  0x26   : > { %385 = vperm.xlu0 %885, %v323_v1   ;;  %v335_v21 = vmul.f32 255.0, %v334_v16 }
  0x27   : > { %v330_v15 = vmin.f32 %v329_v12, 1.0 }
  0x28   : > { %v426_v24 = vrot.slane %v335_v21, %v348_v18  ;;  %v434_v28 = vrot.slane %v335_v21, %v374_v22  ;;  %v442_v39 = vrot.slane %v335_v21, %v390_v29 }
  0x29   : > { %v331_v20 = vmul.f32 255.0, %v330_v15 }
  0x2b   : > { %v349_v23 = vrot.slane %v331_v20, %v348_v18  ;;  %v375_v27 = vrot.slane %v331_v20, %v374_v22  ;;  %v391_v38 = vrot.slane %v331_v20, %v390_v29 }
  0x94   : > { %v360_v17 = vpop.permute.xlu1 %359 }
  0x98   : > { %v344_v19 = vpop.permute.xlu0 %343 }
  0x99   : > { %v370_v26 = vpop.permute.xlu1 %369  ;;  %v351_v30 = vmul.f32 %v349_v23, %v344_v19  ;;  %v428_v31 = vmul.f32 %v426_v24, %v344_v19 }
  0x9a   : > { %v377_v36 = vmul.f32 %v375_v27, %v370_v26  ;;  %v436_v37 = vmul.f32 %v434_v28, %v370_v26 }
  0x9b   : > { %v363_v44 = vadd.f32 %v360_v17, %v351_v30  ;;  %v430_v45 = vadd.f32 %v428_v31, %v360_v17 }
  0x9c   : > { %v339_v25 = vpop.permute.xlu0 %338 }
  0x9d   : > { %v350_v33 = vmul.f32 %v349_v23, %v339_v25  ;;  %v427_v34 = vmul.f32 %v426_v24, %v339_v25  ;;  %v366_v35 = vpop.permute.xlu1 %365  ;;  %v379_v47 = vadd.f32 %v377_v36, %v363_v44  ;;  %v438_v48 = vadd.f32 %v436_v37, %v430_v45 }
  0x9e   : > { %v376_v42 = vmul.f32 %v375_v27, %v366_v35  ;;  %v435_v43 = vmul.f32 %v434_v28, %v366_v35 }
  0xa0   : > { %v355_v32 = vpop.permute.xlu0 %354 }
  0xa1   : > { %v362_v40 = vadd.f32 %v355_v32, %v350_v33  ;;  %v429_v41 = vadd.f32 %v427_v34, %v355_v32 }
  0xa2   : > { %v382_v51 = vpop.permute.xlu1 %381 }
  0xa3   : > { %v378_v52 = vadd.f32 %v376_v42, %v362_v40  ;;  %v437_v53 = vadd.f32 %v435_v43, %v429_v41  ;;  %v392_v54 = vmul.f32 %v391_v38, %v382_v51  ;;  %v443_v55 = vmul.f32 %v442_v39, %v382_v51 }
  0xa5   : > { %v386_v46 = vpop.permute.xlu0 %385  ;;  %v394_v58 = vadd.f32 %v392_v54, %v378_v52  ;;  %v445_v59 = vadd.f32 %v443_v55, %v437_v53 }
  0xa6   : > { %v393_v49 = vmul.f32 %v391_v38, %v386_v46  ;;  %v444_v50 = vmul.f32 %v442_v39, %v386_v46 }
  0xa8   : > { %v395_v56 = vadd.f32 %v393_v49, %v379_v47  ;;  %v446_v57 = vadd.f32 %v444_v50, %v438_v48 }
  0xaa   : > { %v397_v60 = vsel %vm396_vm0, %v395_v56, -inf  ;;  %v447_v61 = vsel %vm396_vm0, %v446_v57, -inf }
  0xab   : > { %v398_v62 = vmax.f32 %v394_v58, %v397_v60  ;;  %v448_v63 = vmax.f32 %v445_v59, %v447_v61 }
  0xad   : > { %v399_v0 = vrot.slane %v398_v62, 4  ;;  %v449_v1 = vrot.slane %v448_v63, 4 }
  0xaf   : > { %v400_v2 = vmax.f32 %v398_v62, %v399_v0  ;;  %v450_v3 = vmax.f32 %v448_v63, %v449_v1 }
  0xb1   : > { %v401_v4 = vrot.slane %v400_v2, 2  ;;  %v451_v5 = vrot.slane %v450_v3, 2 }
  0xb3   : > { %v402_v6 = vmax.f32 %v400_v2, %v401_v4  ;;  %v452_v7 = vmax.f32 %v450_v3, %v451_v5 }
  0xb5   : > { %v403_v8 = vrot.slane %v402_v6, 1  ;;  %v453_v9 = vrot.slane %v452_v7, 1 }
  0xb7   : > { %v404_v10 = vmax.f32 %v402_v6, %v403_v8  ;;  %v454_v11 = vmax.f32 %v452_v7, %v453_v9 }
  0xb9   : > { %v405_v12 = vsub.f32 %v394_v58, %v404_v10  ;;  %v406_v13 = vsub.f32 %v395_v56, %v404_v10  ;;  %v455_v14 = vsub.f32 %v445_v59, %v454_v11  ;;  %v456_v15 = vsub.f32 %v446_v57, %v454_v11 }
  0xbb   : > { %v407_v16 = vmul.f32 1.442695, %v405_v12  ;;  %v409_v17 = vmul.f32 1.442695, %v406_v13  ;;  %v457_v18 = vmul.f32 1.442695, %v455_v14 }
  0xbc   : > { %v459_v19 = vmul.f32 1.442695, %v456_v15 }
  0xbd   : > { %887 = vpow2.f32 %v407_v16 }
  0xbe   : > { %889 = vpow2.f32 %v409_v17 }
  0xbf   : > { %891 = vpow2.f32 %v457_v18 }
  0xc0   : > { %893 = vpow2.f32 %v459_v19 }
  0xc7   : > { %v888_v20 = vpop.eup %887 }
  0xc8   : > { %v890_v21 = vpop.eup %889 }
  0xc9   : > { %v892_v22 = vpop.eup %891  ;;  %v411_v23 = vsel %vm396_vm0, %v890_v21, 0.0 }
  0xca   : > { %v894_v24 = vpop.eup %893  ;;  %v412_v25 = vadd.f32 %v888_v20, %v411_v23 }
  0xcb   : > { %v461_v26 = vsel %vm396_vm0, %v894_v24, 0.0 }
  0xcc   : > { %v413_v27 = vrot.slane %v412_v25, 4  ;;  %v462_v28 = vadd.f32 %v892_v22, %v461_v26 }
  0xce   : > { %v414_v29 = vadd.f32 %v413_v27, %v412_v25  ;;  %v463_v30 = vrot.slane %v462_v28, 4 }
  0xd0   : > { %v415_v31 = vrot.slane %v414_v29, 2  ;;  %v464_v32 = vadd.f32 %v463_v30, %v462_v28 }
  0xd2   : > { %v416_v33 = vadd.f32 %v415_v31, %v414_v29  ;;  %v465_v34 = vrot.slane %v464_v32, 2 }
  0xd4   : > { %v417_v35 = vrot.slane %v416_v33, 1  ;;  %v466_v36 = vadd.f32 %v465_v34, %v464_v32 }
  0xd6   : > { %v418_v37 = vadd.f32 %v417_v35, %v416_v33  ;;  %v467_v38 = vrot.slane %v466_v36, 1 }
  0xd8   : > { %895 = vrcp.f32 %v418_v37  ;;  %v468_v39 = vadd.f32 %v467_v38, %v466_v36 }
  0xda   : > { %897 = vrcp.f32 %v468_v39 }
  0xe2   : > { %v896_v40 = vpop.eup %895 }
  0xe3   : > { %v421_v41 = vmul.f32 %v896_v40, %v888_v20  ;;  %v422_v42 = vmul.f32 %v896_v40, %v890_v21 }
  0xe4   : > { %v898_v43 = vpop.eup %897 }
  0xe5   : > { %v471_v44 = vmul.f32 %v898_v43, %v892_v22  ;;  %v472_v45 = vmul.f32 %v898_v43, %v894_v24  ;;  %473 = vst [vmem:[%s1143_s14] sm:$0xff] %v421_v41  ;;  %474 = vst [vmem:[%s1143_s14 + $0x8] sm:$0x7] %v422_v42  ;;  %v483_v46 = vand.u32 2147483647, %v421_v41  ;;  %v484_v47 = vand.u32 2147483647, %v422_v42 }
  0xe6   : > { %v477_v59 = vmax.f32 %v421_v41, 0.0  ;;  %v478_v63 = vmax.f32 %v422_v42, 0.0 }
  0xe7   : > { %475 = vst [vmem:[%s1147_s16] sm:$0xff] %v471_v44  ;;  %476 = vst [vmem:[%s1147_s16 + $0x8] sm:$0x7] %v472_v45  ;;  %v485_v48 = vsub.f32 0.0, %v483_v46  ;;  %v486_v49 = vsub.f32 0.0, %v484_v47  ;;  %v479_v60 = vmul.f32 %v471_v44, %v421_v41  ;;  %v480_v0 = vmul.f32 %v472_v45, %v422_v42 }
  0xe9   : > { %v487_v50 = vmul.f32 1.442695, %v485_v48  ;;  %v489_v51 = vmul.f32 1.442695, %v486_v49  ;;  %v481_v6 = vsub.f32 %v477_v59, %v479_v60  ;;  %v482_v9 = vsub.f32 %v478_v63, %v480_v0 }
  0xeb   : > { %899 = vpow2.f32 %v487_v50 }
  0xec   : > { %901 = vpow2.f32 %v489_v51  ;;  %v572_v24 = vld [vmem:[%s1143_s14] sm:$0xff] (%p1093_p3)  ;;  %v574_v25 = vld [vmem:[%s1143_s14 + $0x8] sm:$0xff] (%p1093_p3) }
  0xed   : > { %573 = vst [vmem:[%s542_s0] sm:$0xff] (%p1093_p3), %v572_v24  ;;  %575 = vst [vmem:[%s542_s0 + $0x10] sm:$0xff] (%p1093_p3), %v574_v25 }
  0xf5   : > { %v900_v52 = vpop.eup %899 }
  0xf6   : > { %v902_v53 = vpop.eup %901  ;;  %v491_v54 = vadd.f32 1.0, %v900_v52  ;;  %v494_v56 = vmul.f32 -0.5, %v900_v52  ;;  %v497_v61 = vand.u32 2147483647, %v900_v52 }
  0xf7   : > { %v500_v55 = vadd.f32 1.0, %v902_v53  ;;  %v503_v57 = vmul.f32 -0.5, %v902_v53  ;;  %v506_v1 = vand.u32 2147483647, %v902_v53 }
  0xf8   : > { %903 = vlog2.f32 %v491_v54  ;;  %v495_v58 = vadd.f32 1.0, %v494_v56  ;;  %vm498_vm1 = vcmp.lt.f32.partialorder %v497_v61, 0.0004427343 }
  0xf9   : > { %905 = vlog2.f32 %v500_v55  ;;  %v504_v62 = vadd.f32 1.0, %v503_v57  ;;  %vm507_vm2 = vcmp.lt.f32.partialorder %v506_v1, 0.0004427343 }
  0xfa   : > { %v496_v5 = vmul.f32 %v900_v52, %v495_v58 }
  0xfb   : > { %v505_v8 = vmul.f32 %v902_v53, %v504_v62 }
 0x102   : > { %v904_v2 = vpop.eup %903 }
 0x103   : > { %v906_v3 = vpop.eup %905  ;;  %v493_v4 = vmul.f32 0.6931472, %v904_v2 }
 0x104   : > { %v502_v7 = vmul.f32 0.6931472, %v906_v3 }
 0x105   : > { %v499_v10 = vsel %vm498_vm1, %v496_v5, %v493_v4 }
 0x106   : > { %v508_v11 = vsel %vm507_vm2, %v505_v8, %v502_v7  ;;  %v509_v12 = vadd.f32 %v499_v10, %v481_v6 }
 0x107   : > { %v510_v13 = vadd.f32 %v508_v11, %v482_v9 }
 0x109   : > { %v511_v14 = vsel %vm396_vm0, %v510_v13, 0.0 }
 0x10a   : > { %v512_v15 = vadd.f32 %v511_v14, %v509_v12 }
 0x10c   : > { %513 = vadd.xlane.f32.xlu1 %v512_v15 }
 0x199   : > { %v514_v16 = vpop.xlane.xlu1 %513 }
 0x19a   : > { %v515_v17 = vrot.slane %v514_v16, 4 }
 0x19c   : > { %v516_v18 = vadd.f32 %v515_v17, %v514_v16 }
 0x19e   : > { %v517_v19 = vrot.slane %v516_v18, 2 }
 0x1a0   : > { %v518_v20 = vadd.f32 %v517_v19, %v516_v18 }
 0x1a2   : > { %v519_v21 = vrot.slane %v518_v20, 1 }
 0x1a4   : > { %v520_v22 = vadd.f32 %v519_v21, %v518_v20 }
 0x1a6   : > { %806 = vpush %v520_v22 }
 0x1d3   : > { %538 = sbr.rel (!%p1093_p3) target bundleno = 474 (0x1da), region = 40 }
 0x1d7   : > { %s807_s17 = spop %806 }
 0x1d8   : > { %v522_v23 = vstv %s807_s17 }
 0x1d9   : > { %523 = vst [vmem:[%s305_s18] sm:$0x1] %v522_v23 }
 0x1da PF: > { %581 = sbr.rel (!%p1093_p3) target bundleno = 481 (0x1e1), region = 78  ;;  %s800_s17 = sshll.u32 (%p1093_p3), %s989_s25, 2  ;;  %v615_v26 = vld [vmem:[%s1147_s16] sm:$0xff] (%p1093_p3)  ;;  %v617_v27 = vld [vmem:[%s1147_s16 + $0x8] sm:$0xff] (%p1093_p3) }
 0x1db   : > { %s583_s19 = sadd.s32 (%p1093_p3), %s985_s24, %s800_s17 }
 0x1dc   : > { %s801_s14 = sshll.u32 (%p1093_p3), %s583_s19, 3 }
 0x1dd   : > { %s585_s9 = scalar_lea.vmem (%p1093_p3), %s1230_s5, %s801_s14 }
 0x1de   : > { %616 = vst [vmem:[%s585_s9] sm:$0xff] (%p1093_p3), %v615_v26  ;;  %618 = vst [vmem:[%s585_s9 + $0x10] sm:$0xff] (%p1093_p3), %v617_v27 }
 0x1e1 PF: > { %s802_s0 = sshll.u32 %s989_s25, 1  ;;  %s633_s30 = sshll.u32 %s305_s18, 4  ;;  %s1174_s30 = int_to_ptr.vmem [resolvable:$true] %s633_s30 }
 0x1e2   : > { %s629_s13 = sadd.s32 %s985_s24, %s802_s0  ;;  %s907_s14 = scalar_lea.vmem %s1174_s30, 16 }
 0x1e3   : > { %s803_s16 = sshll.u32 %s629_s13, 4  ;;  %p908_p0 = scmp.ne.s32.totalorder %s1174_s30, %s907_s14 }
 0x1e4   : > { %s631_s20 = scalar_lea.hbm %s1231_s6, %s803_s16  ;;  %s1006_s29 = smov [#allocation4]  }
 0x1e5   : > { %p909_p1 = pnand %p908_p0, %p1093_p3  ;;  %s911_s9 = sshll.u32 %s1006_s29, 4  ;;  %s912_s9 = int_to_ptr.vmem [resolvable:$false] %s911_s9 }
 0x1e6   : > { %s913_s25 = scalar_lea.vmem %s912_s9, 32  ;;  %p914_p4 = scmp.lt.s32.totalorder %s1174_s30, %s912_s9 }
 0x1e7   : > { %p910_p2 = pneg %p909_p1  ;;  %p915_p5 = scmp.lt.s32.totalorder %s913_s25, %s907_s14 }
 0x1e9   : > { %p916_p6 = por %p915_p5, %p914_p4 }
 0x1eb   : > { %p917_p7 = pnand %p916_p6, %p910_p2 }
 0x1ed   : > { %920 = shalt.err (!%p917_p7)
}
 0x1ee   : > { %s921_s24 = scalar_lea.hbm %s631_s20, 16  ;;  %s925_s13 = scalar_lea.hbm %s1231_s6, 64 }
 0x1ef   : > { %p922_p9 = scmp.ne.s32.totalorder %s631_s20, %s921_s24  ;;  %p926_p12 = scmp.lt.u32.totalorder %s631_s20, %s1231_s6 }
 0x1f0   : > { %p927_p13 = scmp.lt.u32.totalorder %s925_s13, %s921_s24  ;;  %p929_p1 = scmp.lt.u32.totalorder %s921_s24, %s631_s20 }
 0x1f1   : > { %p923_p10 = pnand %p922_p9, %p1093_p3 }
 0x1f2   : > { %p928_p0 = por %p927_p13, %p926_p12 }
 0x1f3   : > { %p924_p11 = pneg %p923_p10 }
 0x1f4   : > { %p930_p4 = por %p929_p1, %p928_p0 }
 0x1f6   : > { %p931_p2 = pnand %p930_p4, %p924_p11 }
 0x1f8   : > { %934 = shalt.err (!%p931_p2)
}
 0x1f9   : > { %s1236_s17 = scalar_lea.sflag [#allocation5], %s1140_s12 }
 0x1fa   : > { %808 = dma.vmem_to_hbm [thread:$0]  (%p1093_p3), %s1174_s30, 16, %s631_s20, %s1236_s17  }
 0x1fb PF: > { %p814_p5 = scmp.ge.s32.totalorder %s1001_s28, 2  ;;  %s659_s14 = sand.u32 1, %s973_s21  }
 0x1fc   : > { %s660_s29 = scalar_lea.sflag [#allocation5], %s659_s14 }
 0x1fd   : > { %p811_p6 = pnand %p814_p5, %p1102_p8 }
 0x1ff   : > { %968 = dma.done.wait (!%p811_p6), %s660_s29, 16  }
 0x200   : > { %970 = vsyncadd (!%p811_p6), %s660_s29, 4294967280  ;;  %s20_s28 = sadd.s32 1, %s1001_s28   ;;  %s1237_s21 = smov %s977_s22 }
 0x201   : > { %p17_p7 = scmp.ge.s32.totalorder %s20_s28, 6   ;;  %s1238_s22 = smov %s981_s23 }
 0x202   : > { %s1239_s23 = smov %s1111_s15  ;;  %s1240_s24 = smov %s993_s26 }
 0x203   : > { %s1241_s25 = smov %s997_s27  ;;  %s1242_s26 = smov %s1245_s7 }
 0x204   : > { %s1243_s27 = smov %s1249_s8  ;;  %19 = sbr.rel (!%p17_p7) target bundleno = 7 (0x7), region = 174 }
 0x20b   :  { %664 = vsyncpa [#allocation5], 1 }
 0x20c   :  { %666 = vsyncpa [#allocation5 + $0x1], 1 }

</bundles_post_ra>
